<compile_context>
chip_gen: v7x
topology: tpu7x:2x2x1
jax: 0.10.0
libtpu: 0.0.40
codegen_flags: <defaults>
</compile_context>

<pallas_src>
import jax
import jax.numpy as jnp
from jax.experimental import pallas as pl
from jax.experimental.pallas import tpu as pltpu


# ------------------------------ Pallas kernel --------------------------------

def make_gin_fused_kernel(num_layers):
    """Build a fused kernel for `num_layers` GIN layers + pooling head.

    Ref order: x, [A_hat_l, w1_l, b1_l, w2f_l, b2f_l] * num_layers,
               P, lin1_w, lin1_b, lin2_w, lin2_b, out
    All intermediates stay as VMEM/vreg values inside the single invocation;
    only the final (G, OUT_C) log-probs are written to HBM.
    """

    def kernel(*refs):
        idx = 0
        x = refs[idx][...]
        idx += 1

        # ---- GIN layers: relu(BN_folded(mlp(A_hat @ x))) ----
        for _ in range(num_layers):
            a_ref, w1_ref, b1_ref, w2_ref, b2_ref = refs[idx:idx + 5]
            idx += 5
            # sum-aggregation + (1+eps)*self folded into A_hat
            h = jnp.dot(a_ref[...], x, preferred_element_type=jnp.float32)
            # MLP: Linear -> ReLU -> Linear(BN folded into w2/b2) -> ReLU
            h = jnp.dot(h, w1_ref[...], preferred_element_type=jnp.float32) + b1_ref[...]
            h = jnp.maximum(h, 0.0)
            h = jnp.dot(h, w2_ref[...], preferred_element_type=jnp.float32) + b2_ref[...]
            x = jnp.maximum(h, 0.0)

        # ---- head: global_add_pool -> relu(lin1) -> dropout(eval=id) -> lin2 ----
        p_ref, lw1_ref, lb1_ref, lw2_ref, lb2_ref, out_ref = refs[idx:idx + 6]
        pooled = jnp.dot(p_ref[...], x, preferred_element_type=jnp.float32)
        h = jnp.dot(pooled, lw1_ref[...], preferred_element_type=jnp.float32) + lb1_ref[...]
        h = jnp.maximum(h, 0.0)
        # TODO(synk): dropout(p=0.5) implemented as eval-mode identity (no RNG mask).
        logits = jnp.dot(h, lw2_ref[...], preferred_element_type=jnp.float32) + lb2_ref[...]
        # log_softmax (max-shifted)
        m = jnp.max(logits, axis=-1, keepdims=True)
        lse = jnp.log(jnp.sum(jnp.exp(logits - m), axis=-1, keepdims=True)) + m
        out_ref[...] = logits - lse

    return kernel


# ------------------------------ wrapper ---------------------------------------

def _vmem_spec(shape):
    nd = len(shape)
    return pl.BlockSpec(shape, lambda *_: (0,) * nd)


def gin_forward(params, x, A, P):
    """Single fused pallas_call for the whole forward pass (eval semantics)."""
    num_layers = len(params["layers"])
    N = x.shape[0]
    eye = jnp.eye(N, dtype=jnp.float32)

    inputs = [x]
    for lp in params["layers"]:
        # Fold (1+eps) self-loop into the adjacency (f32, in glue).
        a_hat = A + (1.0 + lp["eps"][0]) * eye
        # Fold eval-mode BatchNorm into the second MLP linear (f32, in glue).
        s = lp["gamma"] * jax.lax.rsqrt(lp["rv"] + 1e-5)       # (1, H)
        w2f = lp["w2"] * s                                     # (2H, H)
        b2f = (lp["b2"] - lp["rm"]) * s + lp["beta"]           # (1, H)
        inputs += [a_hat, lp["w1"], lp["b1"], w2f, b2f]
    inputs += [P, params["lin1_w"], params["lin1_b"],
               params["lin2_w"], params["lin2_b"]]

    G = P.shape[0]
    out_c = params["lin2_w"].shape[1]

    return pl.pallas_call(
        make_gin_fused_kernel(num_layers),
        out_shape=jax.ShapeDtypeStruct((G, out_c), jnp.float32),
        grid=(1,),
        in_specs=[_vmem_spec(a.shape) for a in inputs],
        out_specs=_vmem_spec((G, out_c)),
        compiler_params=pltpu.CompilerParams(
            dimension_semantics=("arbitrary",)),
    )(*inputs)


# ------------------------------ reference (plain JAX) -------------------------

def gin_forward_ref(params, x, A, P):
    for lp in params["layers"]:
        agg = A @ x
        h = (1.0 + lp["eps"][0]) * x + agg
        h1 = jnp.maximum(h @ lp["w1"] + lp["b1"], 0.0)
        h2 = h1 @ lp["w2"] + lp["b2"]
        y = (h2 - lp["rm"]) * jax.lax.rsqrt(lp["rv"] + 1e-5) * lp["gamma"] + lp["beta"]
        x = jnp.maximum(y, 0.0)
    pooled = P @ x
    h = jnp.maximum(pooled @ params["lin1_w"] + params["lin1_b"], 0.0)
    logits = h @ params["lin2_w"] + params["lin2_b"]
    return jax.nn.log_softmax(logits, axis=-1)


# ------------------------------ main ------------------------------------------

if __name__ == "__main__":
    N = 16            # num nodes
    IN_C = 8          # in_channels
    H = 32            # hidden_channels
    OUT_C = 4         # out_channels
    NUM_LAYERS = 2
    G = 2             # num graphs

    key = jax.random.PRNGKey(0)

    # Node features
    key, kx = jax.random.split(key)
    x = jax.random.normal(kx, (N, IN_C), dtype=jnp.float32)

    # Graph structure: two ring graphs of 8 nodes each, bidirectional edges.
    src, dst = [], []
    per = N // G
    for g in range(G):
        base = g * per
        for i in range(per):
            j = (i + 1) % per
            src += [base + i, base + j]
            dst += [base + j, base + i]
    edge_index = jnp.array([src, dst], dtype=jnp.int32)       # [2, E]
    batch = jnp.repeat(jnp.arange(G, dtype=jnp.int32), per)   # [N]

    # Dense aggregation matrix A[i, j] = #edges j -> i  (GINConv sum-aggregate)
    A = jnp.zeros((N, N), jnp.float32).at[edge_index[1], edge_index[0]].add(1.0)
    # Pooling matrix for global_add_pool: P[g, n] = 1 if batch[n] == g
    P = (batch[None, :] == jnp.arange(G, dtype=jnp.int32)[:, None]).astype(jnp.float32)

    # Deterministic parameter init (synthetic, PyTorch-like shapes, weights
    # stored pre-transposed as (in, out) so the kernel computes x @ W + b).
    def lin_init(k, fan_in, fan_out):
        k1, k2 = jax.random.split(k)
        scale = 1.0 / jnp.sqrt(float(fan_in))
        w = jax.random.uniform(k1, (fan_in, fan_out), jnp.float32, -scale, scale)
        b = jax.random.uniform(k2, (1, fan_out), jnp.float32, -scale, scale)
        return w, b

    params = {"layers": []}
    c_in = IN_C
    for _ in range(NUM_LAYERS):
        key, k1, k2 = jax.random.split(key, 3)
        w1, b1 = lin_init(k1, c_in, 2 * H)
        w2, b2 = lin_init(k2, 2 * H, H)
        params["layers"].append({
            "eps": jnp.zeros((1,), jnp.float32),          # GINConv train_eps init
            "w1": w1, "b1": b1, "w2": w2, "b2": b2,
            "gamma": jnp.ones((1, H), jnp.float32),       # BatchNorm defaults
            "beta": jnp.zeros((1, H), jnp.float32),
            "rm": jnp.zeros((1, H), jnp.float32),
            "rv": jnp.ones((1, H), jnp.float32),
        })
        c_in = H
    key, k1, k2 = jax.random.split(key, 3)
    params["lin1_w"], params["lin1_b"] = lin_init(k1, H, H)
    params["lin2_w"], params["lin2_b"] = lin_init(k2, H, OUT_C)
    # NOTE: self.batch_norm is defined in __init__ but never used in forward.

    out = gin_forward(params, x, A, P)
    out = jax.block_until_ready(out)

    ref = gin_forward_ref(params, x, A, P)
    assert out.shape == (G, OUT_C)
    assert jnp.allclose(out, ref, atol=1e-4, rtol=1e-4), "mismatch vs JAX reference"

    print("KERNEL_OK")
</pallas_src>

<mosaic_0001>
module attributes {stable_mosaic.version = 11 : i64} {
  func.func @kernel(%arg0: i32, %arg1: memref<16x8xf32, #tpu.memory_space<vmem>>, %arg2: memref<16x16xf32, #tpu.memory_space<vmem>>, %arg3: memref<8x64xf32, #tpu.memory_space<vmem>>, %arg4: memref<1x64xf32, #tpu.memory_space<vmem>>, %arg5: memref<64x32xf32, #tpu.memory_space<vmem>>, %arg6: memref<1x32xf32, #tpu.memory_space<vmem>>, %arg7: memref<16x16xf32, #tpu.memory_space<vmem>>, %arg8: memref<32x64xf32, #tpu.memory_space<vmem>>, %arg9: memref<1x64xf32, #tpu.memory_space<vmem>>, %arg10: memref<64x32xf32, #tpu.memory_space<vmem>>, %arg11: memref<1x32xf32, #tpu.memory_space<vmem>>, %arg12: memref<2x16xf32, #tpu.memory_space<vmem>>, %arg13: memref<32x32xf32, #tpu.memory_space<vmem>>, %arg14: memref<1x32xf32, #tpu.memory_space<vmem>>, %arg15: memref<32x4xf32, #tpu.memory_space<vmem>>, %arg16: memref<1x4xf32, #tpu.memory_space<vmem>>, %arg17: memref<2x4xf32, #tpu.memory_space<vmem>>) attributes {dimension_semantics = [#tpu.dimension_semantics<arbitrary>], iteration_bounds = array<i64: 1>, scalar_prefetch = 0 : i64, scratch_operands = 0 : i64, tpu.core_type = #tpu.core_type<tc>, window_params = [{pipeline_mode = #tpu.pipeline_mode<synchronous>, transform_indices = @transform_0, window_bounds = array<i64: 16, 8>}, {pipeline_mode = #tpu.pipeline_mode<synchronous>, transform_indices = @transform_1, window_bounds = array<i64: 16, 16>}, {pipeline_mode = #tpu.pipeline_mode<synchronous>, transform_indices = @transform_2, window_bounds = array<i64: 8, 64>}, {pipeline_mode = #tpu.pipeline_mode<synchronous>, transform_indices = @transform_3, window_bounds = array<i64: 1, 64>}, {pipeline_mode = #tpu.pipeline_mode<synchronous>, transform_indices = @transform_4, window_bounds = array<i64: 64, 32>}, {pipeline_mode = #tpu.pipeline_mode<synchronous>, transform_indices = @transform_5, window_bounds = array<i64: 1, 32>}, {pipeline_mode = #tpu.pipeline_mode<synchronous>, transform_indices = @transform_6, window_bounds = array<i64: 16, 16>}, {pipeline_mode = #tpu.pipeline_mode<synchronous>, transform_indices = @transform_7, window_bounds = array<i64: 32, 64>}, {pipeline_mode = #tpu.pipeline_mode<synchronous>, transform_indices = @transform_8, window_bounds = array<i64: 1, 64>}, {pipeline_mode = #tpu.pipeline_mode<synchronous>, transform_indices = @transform_9, window_bounds = array<i64: 64, 32>}, {pipeline_mode = #tpu.pipeline_mode<synchronous>, transform_indices = @transform_10, window_bounds = array<i64: 1, 32>}, {pipeline_mode = #tpu.pipeline_mode<synchronous>, transform_indices = @transform_11, window_bounds = array<i64: 2, 16>}, {pipeline_mode = #tpu.pipeline_mode<synchronous>, transform_indices = @transform_12, window_bounds = array<i64: 32, 32>}, {pipeline_mode = #tpu.pipeline_mode<synchronous>, transform_indices = @transform_13, window_bounds = array<i64: 1, 32>}, {pipeline_mode = #tpu.pipeline_mode<synchronous>, transform_indices = @transform_14, window_bounds = array<i64: 32, 4>}, {pipeline_mode = #tpu.pipeline_mode<synchronous>, transform_indices = @transform_15, window_bounds = array<i64: 1, 4>}, {pipeline_mode = #tpu.pipeline_mode<synchronous>, transform_indices = @transform_16, window_bounds = array<i64: 2, 4>}]} {
    %c0 = arith.constant 0 : index
    %c0_0 = arith.constant 0 : index
    %0 = vector.load %arg1[%c0, %c0_0] : memref<16x8xf32, #tpu.memory_space<vmem>>, vector<16x8xf32>
    %c0_1 = arith.constant 0 : index
    %c0_2 = arith.constant 0 : index
    %1 = vector.load %arg2[%c0_1, %c0_2] : memref<16x16xf32, #tpu.memory_space<vmem>>, vector<16x16xf32>
    %cst = arith.constant dense<0.000000e+00> : vector<16x8xf32>
    %2 = tpu.matmul %1, %0, %cst {dimension_numbers = #tpu.dot_dimension_numbers<[1], [0], [0], [1], [0, 0, 1, 1], [], []>} : vector<16x16xf32>, vector<16x8xf32>, vector<16x8xf32> -> vector<16x8xf32>
    %c0_3 = arith.constant 0 : index
    %c0_4 = arith.constant 0 : index
    %3 = vector.load %arg3[%c0_3, %c0_4] : memref<8x64xf32, #tpu.memory_space<vmem>>, vector<8x64xf32>
    %cst_5 = arith.constant dense<0.000000e+00> : vector<16x64xf32>
    %4 = tpu.matmul %2, %3, %cst_5 {dimension_numbers = #tpu.dot_dimension_numbers<[1], [0], [0], [1], [0, 0, 1, 1], [], []>} : vector<16x8xf32>, vector<8x64xf32>, vector<16x64xf32> -> vector<16x64xf32>
    %c0_6 = arith.constant 0 : index
    %c0_7 = arith.constant 0 : index
    %5 = vector.load %arg4[%c0_6, %c0_7] : memref<1x64xf32, #tpu.memory_space<vmem>>, vector<1x64xf32>
    %6 = vector.broadcast %5 : vector<1x64xf32> to vector<16x64xf32>
    %7 = arith.addf %4, %6 : vector<16x64xf32>
    %cst_8 = arith.constant 0.000000e+00 : f32
    %8 = vector.broadcast %cst_8 : f32 to vector<16x64xf32>
    %9 = arith.maximumf %7, %8 : vector<16x64xf32>
    %c0_9 = arith.constant 0 : index
    %c0_10 = arith.constant 0 : index
    %10 = vector.load %arg5[%c0_9, %c0_10] : memref<64x32xf32, #tpu.memory_space<vmem>>, vector<64x32xf32>
    %cst_11 = arith.constant dense<0.000000e+00> : vector<16x32xf32>
    %11 = tpu.matmul %9, %10, %cst_11 {dimension_numbers = #tpu.dot_dimension_numbers<[1], [0], [0], [1], [0, 0, 1, 1], [], []>} : vector<16x64xf32>, vector<64x32xf32>, vector<16x32xf32> -> vector<16x32xf32>
    %c0_12 = arith.constant 0 : index
    %c0_13 = arith.constant 0 : index
    %12 = vector.load %arg6[%c0_12, %c0_13] : memref<1x32xf32, #tpu.memory_space<vmem>>, vector<1x32xf32>
    %13 = vector.broadcast %12 : vector<1x32xf32> to vector<16x32xf32>
    %14 = arith.addf %11, %13 : vector<16x32xf32>
    %cst_14 = arith.constant 0.000000e+00 : f32
    %15 = vector.broadcast %cst_14 : f32 to vector<16x32xf32>
    %16 = arith.maximumf %14, %15 : vector<16x32xf32>
    %c0_15 = arith.constant 0 : index
    %c0_16 = arith.constant 0 : index
    %17 = vector.load %arg7[%c0_15, %c0_16] : memref<16x16xf32, #tpu.memory_space<vmem>>, vector<16x16xf32>
    %cst_17 = arith.constant dense<0.000000e+00> : vector<16x32xf32>
    %18 = tpu.matmul %17, %16, %cst_17 {dimension_numbers = #tpu.dot_dimension_numbers<[1], [0], [0], [1], [0, 0, 1, 1], [], []>} : vector<16x16xf32>, vector<16x32xf32>, vector<16x32xf32> -> vector<16x32xf32>
    %c0_18 = arith.constant 0 : index
    %c0_19 = arith.constant 0 : index
    %19 = vector.load %arg8[%c0_18, %c0_19] : memref<32x64xf32, #tpu.memory_space<vmem>>, vector<32x64xf32>
    %cst_20 = arith.constant dense<0.000000e+00> : vector<16x64xf32>
    %20 = tpu.matmul %18, %19, %cst_20 {dimension_numbers = #tpu.dot_dimension_numbers<[1], [0], [0], [1], [0, 0, 1, 1], [], []>} : vector<16x32xf32>, vector<32x64xf32>, vector<16x64xf32> -> vector<16x64xf32>
    %c0_21 = arith.constant 0 : index
    %c0_22 = arith.constant 0 : index
    %21 = vector.load %arg9[%c0_21, %c0_22] : memref<1x64xf32, #tpu.memory_space<vmem>>, vector<1x64xf32>
    %22 = vector.broadcast %21 : vector<1x64xf32> to vector<16x64xf32>
    %23 = arith.addf %20, %22 : vector<16x64xf32>
    %cst_23 = arith.constant 0.000000e+00 : f32
    %24 = vector.broadcast %cst_23 : f32 to vector<16x64xf32>
    %25 = arith.maximumf %23, %24 : vector<16x64xf32>
    %c0_24 = arith.constant 0 : index
    %c0_25 = arith.constant 0 : index
    %26 = vector.load %arg10[%c0_24, %c0_25] : memref<64x32xf32, #tpu.memory_space<vmem>>, vector<64x32xf32>
    %cst_26 = arith.constant dense<0.000000e+00> : vector<16x32xf32>
    %27 = tpu.matmul %25, %26, %cst_26 {dimension_numbers = #tpu.dot_dimension_numbers<[1], [0], [0], [1], [0, 0, 1, 1], [], []>} : vector<16x64xf32>, vector<64x32xf32>, vector<16x32xf32> -> vector<16x32xf32>
    %c0_27 = arith.constant 0 : index
    %c0_28 = arith.constant 0 : index
    %28 = vector.load %arg11[%c0_27, %c0_28] : memref<1x32xf32, #tpu.memory_space<vmem>>, vector<1x32xf32>
    %29 = vector.broadcast %28 : vector<1x32xf32> to vector<16x32xf32>
    %30 = arith.addf %27, %29 : vector<16x32xf32>
    %cst_29 = arith.constant 0.000000e+00 : f32
    %31 = vector.broadcast %cst_29 : f32 to vector<16x32xf32>
    %32 = arith.maximumf %30, %31 : vector<16x32xf32>
    %c0_30 = arith.constant 0 : index
    %c0_31 = arith.constant 0 : index
    %33 = vector.load %arg12[%c0_30, %c0_31] : memref<2x16xf32, #tpu.memory_space<vmem>>, vector<2x16xf32>
    %cst_32 = arith.constant dense<0.000000e+00> : vector<2x32xf32>
    %34 = tpu.matmul %33, %32, %cst_32 {dimension_numbers = #tpu.dot_dimension_numbers<[1], [0], [0], [1], [0, 0, 1, 1], [], []>} : vector<2x16xf32>, vector<16x32xf32>, vector<2x32xf32> -> vector<2x32xf32>
    %c0_33 = arith.constant 0 : index
    %c0_34 = arith.constant 0 : index
    %35 = vector.load %arg13[%c0_33, %c0_34] : memref<32x32xf32, #tpu.memory_space<vmem>>, vector<32x32xf32>
    %cst_35 = arith.constant dense<0.000000e+00> : vector<2x32xf32>
    %36 = tpu.matmul %34, %35, %cst_35 {dimension_numbers = #tpu.dot_dimension_numbers<[1], [0], [0], [1], [0, 0, 1, 1], [], []>} : vector<2x32xf32>, vector<32x32xf32>, vector<2x32xf32> -> vector<2x32xf32>
    %c0_36 = arith.constant 0 : index
    %c0_37 = arith.constant 0 : index
    %37 = vector.load %arg14[%c0_36, %c0_37] : memref<1x32xf32, #tpu.memory_space<vmem>>, vector<1x32xf32>
    %38 = vector.broadcast %37 : vector<1x32xf32> to vector<2x32xf32>
    %39 = arith.addf %36, %38 : vector<2x32xf32>
    %cst_38 = arith.constant 0.000000e+00 : f32
    %40 = vector.broadcast %cst_38 : f32 to vector<2x32xf32>
    %41 = arith.maximumf %39, %40 : vector<2x32xf32>
    %c0_39 = arith.constant 0 : index
    %c0_40 = arith.constant 0 : index
    %42 = vector.load %arg15[%c0_39, %c0_40] : memref<32x4xf32, #tpu.memory_space<vmem>>, vector<32x4xf32>
    %cst_41 = arith.constant dense<0.000000e+00> : vector<2x4xf32>
    %43 = tpu.matmul %41, %42, %cst_41 {dimension_numbers = #tpu.dot_dimension_numbers<[1], [0], [0], [1], [0, 0, 1, 1], [], []>} : vector<2x32xf32>, vector<32x4xf32>, vector<2x4xf32> -> vector<2x4xf32>
    %c0_42 = arith.constant 0 : index
    %c0_43 = arith.constant 0 : index
    %44 = vector.load %arg16[%c0_42, %c0_43] : memref<1x4xf32, #tpu.memory_space<vmem>>, vector<1x4xf32>
    %45 = vector.broadcast %44 : vector<1x4xf32> to vector<2x4xf32>
    %46 = arith.addf %43, %45 : vector<2x4xf32>
    %cst_44 = arith.constant dense<0xFF800000> : vector<2xf32>
    %47 = vector.multi_reduction <maximumf>, %46, %cst_44 [1] : vector<2x4xf32> to vector<2xf32>
    %48 = vector.shape_cast %47 : vector<2xf32> to vector<2x1xf32>
    %49 = vector.broadcast %48 : vector<2x1xf32> to vector<2x4xf32>
    %50 = arith.subf %46, %49 : vector<2x4xf32>
    %51 = math.exp %50 : vector<2x4xf32>
    %cst_45 = arith.constant dense<0.000000e+00> : vector<2xf32>
    %52 = vector.multi_reduction <add>, %51, %cst_45 [1] : vector<2x4xf32> to vector<2xf32>
    %53 = vector.shape_cast %52 : vector<2xf32> to vector<2x1xf32>
    %54 = math.log %53 : vector<2x1xf32>
    %55 = arith.addf %54, %48 : vector<2x1xf32>
    %56 = vector.broadcast %55 : vector<2x1xf32> to vector<2x4xf32>
    %57 = arith.subf %46, %56 : vector<2x4xf32>
    %c0_46 = arith.constant 0 : index
    %c0_47 = arith.constant 0 : index
    %58 = vector.load %arg17[%c0_46, %c0_47] : memref<2x4xf32, #tpu.memory_space<vmem>>, vector<2x4xf32>
    tpu.vector_store %arg17[%c0_46, %c0_47], %57 {strides = array<i32>} : memref<2x4xf32, #tpu.memory_space<vmem>>, vector<2x4xf32>,
    return
  }
  func.func @transform_0(%arg0: i32) -> (i32, i32) {
    %c0_i32 = arith.constant 0 : i32
    %c0_i32_0 = arith.constant 0 : i32
    %c0_i32_1 = arith.constant 0 : i32
    return %c0_i32, %c0_i32_0 : i32, i32
  }
  func.func @transform_1(%arg0: i32) -> (i32, i32) {
    %c0_i32 = arith.constant 0 : i32
    %c0_i32_0 = arith.constant 0 : i32
    %c0_i32_1 = arith.constant 0 : i32
    return %c0_i32, %c0_i32_0 : i32, i32
  }
  func.func @transform_2(%arg0: i32) -> (i32, i32) {
    %c0_i32 = arith.constant 0 : i32
    %c0_i32_0 = arith.constant 0 : i32
    %c0_i32_1 = arith.constant 0 : i32
    return %c0_i32, %c0_i32_0 : i32, i32
  }
  func.func @transform_3(%arg0: i32) -> (i32, i32) {
    %c0_i32 = arith.constant 0 : i32
    %c0_i32_0 = arith.constant 0 : i32
    %c0_i32_1 = arith.constant 0 : i32
    return %c0_i32, %c0_i32_0 : i32, i32
  }
  func.func @transform_4(%arg0: i32) -> (i32, i32) {
    %c0_i32 = arith.constant 0 : i32
    %c0_i32_0 = arith.constant 0 : i32
    %c0_i32_1 = arith.constant 0 : i32
    return %c0_i32, %c0_i32_0 : i32, i32
  }
  func.func @transform_5(%arg0: i32) -> (i32, i32) {
    %c0_i32 = arith.constant 0 : i32
    %c0_i32_0 = arith.constant 0 : i32
    %c0_i32_1 = arith.constant 0 : i32
    return %c0_i32, %c0_i32_0 : i32, i32
  }
  func.func @transform_6(%arg0: i32) -> (i32, i32) {
    %c0_i32 = arith.constant 0 : i32
    %c0_i32_0 = arith.constant 0 : i32
    %c0_i32_1 = arith.constant 0 : i32
    return %c0_i32, %c0_i32_0 : i32, i32
  }
  func.func @transform_7(%arg0: i32) -> (i32, i32) {
    %c0_i32 = arith.constant 0 : i32
    %c0_i32_0 = arith.constant 0 : i32
    %c0_i32_1 = arith.constant 0 : i32
    return %c0_i32, %c0_i32_0 : i32, i32
  }
  func.func @transform_8(%arg0: i32) -> (i32, i32) {
    %c0_i32 = arith.constant 0 : i32
    %c0_i32_0 = arith.constant 0 : i32
    %c0_i32_1 = arith.constant 0 : i32
    return %c0_i32, %c0_i32_0 : i32, i32
  }
  func.func @transform_9(%arg0: i32) -> (i32, i32) {
    %c0_i32 = arith.constant 0 : i32
    %c0_i32_0 = arith.constant 0 : i32
    %c0_i32_1 = arith.constant 0 : i32
    return %c0_i32, %c0_i32_0 : i32, i32
  }
  func.func @transform_10(%arg0: i32) -> (i32, i32) {
    %c0_i32 = arith.constant 0 : i32
    %c0_i32_0 = arith.constant 0 : i32
    %c0_i32_1 = arith.constant 0 : i32
    return %c0_i32, %c0_i32_0 : i32, i32
  }
  func.func @transform_11(%arg0: i32) -> (i32, i32) {
    %c0_i32 = arith.constant 0 : i32
    %c0_i32_0 = arith.constant 0 : i32
    %c0_i32_1 = arith.constant 0 : i32
    return %c0_i32, %c0_i32_0 : i32, i32
  }
  func.func @transform_12(%arg0: i32) -> (i32, i32) {
    %c0_i32 = arith.constant 0 : i32
    %c0_i32_0 = arith.constant 0 : i32
    %c0_i32_1 = arith.constant 0 : i32
    return %c0_i32, %c0_i32_0 : i32, i32
  }
  func.func @transform_13(%arg0: i32) -> (i32, i32) {
    %c0_i32 = arith.constant 0 : i32
    %c0_i32_0 = arith.constant 0 : i32
    %c0_i32_1 = arith.constant 0 : i32
    return %c0_i32, %c0_i32_0 : i32, i32
  }
  func.func @transform_14(%arg0: i32) -> (i32, i32) {
    %c0_i32 = arith.constant 0 : i32
    %c0_i32_0 = arith.constant 0 : i32
    %c0_i32_1 = arith.constant 0 : i32
    return %c0_i32, %c0_i32_0 : i32, i32
  }
  func.func @transform_15(%arg0: i32) -> (i32, i32) {
    %c0_i32 = arith.constant 0 : i32
    %c0_i32_0 = arith.constant 0 : i32
    %c0_i32_1 = arith.constant 0 : i32
    return %c0_i32, %c0_i32_0 : i32, i32
  }
  func.func @transform_16(%arg0: i32) -> (i32, i32) {
    %c0_i32 = arith.constant 0 : i32
    %c0_i32_0 = arith.constant 0 : i32
    %c0_i32_1 = arith.constant 0 : i32
    return %c0_i32, %c0_i32_0 : i32, i32
  }
}

</mosaic_0001>

<bundles_post_ra>
// kernel: tpu_custom_call.1
= control target key start
LH: loop header
LB: loop body
LE: loop exit
PB: predicated region body
PF: predicated region fallthrough
CT: control target
= control target key end

     0   :  { %s1388_s0 = inlined_call_operand.vmem [shape: f32[16,8], index: 0, kind: input, shape index: {}]   ;;  %s1389_s1 = inlined_call_operand.vmem [shape: f32[16,16], index: 1, kind: input, shape index: {}]   ;;  %s1390_s2 = inlined_call_operand.vmem [shape: f32[8,64], index: 2, kind: input, shape index: {}]   ;;  %s1391_s3 = inlined_call_operand.vmem [shape: f32[1,64], index: 3, kind: input, shape index: {}]   ;;  %s1392_s4 = inlined_call_operand.vmem [shape: f32[64,32], index: 4, kind: input, shape index: {}]   ;;  %s1393_s5 = inlined_call_operand.vmem [shape: f32[1,32], index: 5, kind: input, shape index: {}]   ;;  %s1394_s6 = inlined_call_operand.vmem [shape: f32[16,16], index: 6, kind: input, shape index: {}]   ;;  %s1395_s7 = inlined_call_operand.vmem [shape: f32[32,64], index: 7, kind: input, shape index: {}]   ;;  %s1396_s8 = inlined_call_operand.vmem [shape: f32[1,64], index: 8, kind: input, shape index: {}]   ;;  %s1397_s9 = inlined_call_operand.vmem [shape: f32[64,32], index: 9, kind: input, shape index: {}]   ;;  %s1398_s10 = inlined_call_operand.vmem [shape: f32[1,32], index: 10, kind: input, shape index: {}]   ;;  %s1399_s11 = inlined_call_operand.vmem [shape: f32[2,16], index: 11, kind: input, shape index: {}]   ;;  %s1400_s12 = inlined_call_operand.vmem [shape: f32[32,32], index: 12, kind: input, shape index: {}]   ;;  %s1401_s13 = inlined_call_operand.vmem [shape: f32[1,32], index: 13, kind: input, shape index: {}]   ;;  %s1402_s14 = inlined_call_operand.vmem [shape: f32[32,4], index: 14, kind: input, shape index: {}]   ;;  %s1403_s15 = inlined_call_operand.vmem [shape: f32[1,4], index: 15, kind: input, shape index: {}]   ;;  %s1404_s16 = inlined_call_operand.hbm [shape: f32[2,4], index: 16, kind: output, shape index: {}]  }
   0x1   :  { %1406 = sst [smem:[#allocation5_spill]] %s1388_s0 }
   0x2   :  { %s1407_s23 = sld [smem:[#allocation5_spill]]  ;;  %v56_v2 = vld [vmem:[%s1389_s1] sm:$0xff]  ;;  %vm58_vm0 = vcmask 130048  }
   0x3   :  { %954 = vmatprep.mubr.msk.f32.mxu0 %vm58_vm0, %v56_v2 }
   0x8   :  { %v54_v0 = vld [vmem:[%s1407_s23] sm:$0xff]  ;;  %v55_v1 = vld [vmem:[%s1407_s23 + $0x8] sm:$0xff] }
   0x9   :  { %v1047_v3 = vpack.c.bf16 %v55_v1, %v54_v0 }
   0xa   :  { %21 = vsyncpa [#allocation3], 0  ;;  %v140_v4 = vld [vmem:[%s1390_s2] sm:$0xff]  ;;  %v57_v5 = vld [vmem:[%s1389_s1 + $0x8] sm:$0xff]  ;;  %vm148_vm1 = vcmask 64512   ;;  %vm247_vm2 = vcmask 523264  }
   0xb   :  { %1048 = vmatprep.subr.bf16.mxu0 %v1047_v3  ;;  %v232_v6 = vld [vmem:[%s1392_s4] sm:$0xff]  ;;  %v233_v7 = vld [vmem:[%s1392_s4 + $0x8] sm:$0xff]  ;;  %v234_v8 = vld [vmem:[%s1392_s4 + $0x10] sm:$0xff]  ;;  %vm425_vm3 = vcmask 261120   ;;  %v1142_v0 = vmov 0.0|0.0   ;;  %vm1143_vm4 = vmmov 0  }
   0xc   :  { %1050 = vmatpush3.bf16.msra.mxu0 %v1047_v3  ;;  %v1051_v9 = vpack.c.bf16 %v233_v7, %v232_v6  ;;  %v235_v10 = vld [vmem:[%s1392_s4 + $0x18] sm:$0xff]  ;;  %v236_v12 = vld [vmem:[%s1392_s4 + $0x20] sm:$0xff]  ;;  %v237_v13 = vld [vmem:[%s1392_s4 + $0x28] sm:$0xff]  ;;  %v1144_v1 = vmov 0.0   ;;  %vm850_vm5 = vcmask 25600  }
   0xd   :  { %957 = vmatprep.subr.mxu0 %v140_v4  ;;  %v1055_v11 = vpack.c.bf16 %v235_v10, %v234_v8  ;;  %v1059_v14 = vpack.c.bf16 %v237_v13, %v236_v12  ;;  %v238_v17 = vld [vmem:[%s1392_s4 + $0x30] sm:$0xff]  ;;  %v239_v18 = vld [vmem:[%s1392_s4 + $0x38] sm:$0xff]  ;;  %v881_v20 = vld [vmem:[%s1391_s3] ss:$0 sm:$0xff] }
   0xe   :  { %1052 = vmatprep.subr.bf16.mxu1 %v1051_v9  ;;  %v1063_v19 = vpack.c.bf16 %v239_v18, %v238_v17  ;;  %v331_v27 = vld [vmem:[%s1394_s6] sm:$0xff]  ;;  %v415_v35 = vld [vmem:[%s1395_s7 + $0x8] sm:$0xff]  ;;  %v416_v39 = vld [vmem:[%s1395_s7 + $0x10] sm:$0xff] }
   0xf   :  { %955 = vmatmul.mubr.msk.f32.vlgmr.msra.gmra.mrb[0].mxu0 %vm58_vm0, %v57_v5  ;;  %1054 = vmatpush3.bf16.msra.mxu1 %v1051_v9  ;;  %v884_v28 = vld [vmem:[%s1393_s5] ss:$0 sm:$0xff]  ;;  %v417_v40 = vld [vmem:[%s1395_s7 + $0x18] sm:$0xff]  ;;  %v332_v41 = vld [vmem:[%s1394_s6 + $0x8] sm:$0xff] }
  0x10   :  { %958 = vmatpush3.msra.mxu0 %v140_v4  ;;  %1056 = vmatprep.subr.bf16.mxu1 %v1055_v11  ;;  %v414_v34 = vld [vmem:[%s1395_s7] sm:$0xff]  ;;  %v1075_v42 = vpack.c.bf16 %v417_v40, %v416_v39  ;;  %v510_v44 = vld [vmem:[%s1397_s9 + $0x8] sm:$0xff]  ;;  %v511_v46 = vld [vmem:[%s1397_s9 + $0x10] sm:$0xff] }
  0x11   :  { %v1071_v38 = vpack.c.bf16 %v415_v35, %v414_v34  ;;  %v509_v43 = vld [vmem:[%s1397_s9] sm:$0xff]  ;;  %v512_v47 = vld [vmem:[%s1397_s9 + $0x18] sm:$0xff]  ;;  %v514_v52 = vld [vmem:[%s1397_s9 + $0x28] sm:$0xff] }
  0x12   :  { %v1079_v45 = vpack.c.bf16 %v510_v44, %v509_v43  ;;  %v1083_v50 = vpack.c.bf16 %v512_v47, %v511_v46  ;;  %v513_v51 = vld [vmem:[%s1397_s9 + $0x20] sm:$0xff]  ;;  %v515_v54 = vld [vmem:[%s1397_s9 + $0x30] sm:$0xff]  ;;  %v516_v55 = vld [vmem:[%s1397_s9 + $0x38] sm:$0xff] }
  0x13   :  { %1058 = vmatpush3.bf16.msra.mxu1 %v1055_v11  ;;  %v1087_v53 = vpack.c.bf16 %v514_v52, %v513_v51  ;;  %v1091_v56 = vpack.c.bf16 %v516_v55, %v515_v54  ;;  %v889_v57 = vld [vmem:[%s1396_s8] ss:$0 sm:$0xff]  ;;  %v682_v10 = vld [vmem:[%s1400_s12 + $0x8] sm:$0xff] }
  0x14   :  { %1060 = vmatprep.subr.bf16.mxu1 %v1059_v14  ;;  %v892_v2 = vld [vmem:[%s1398_s10] ss:$0 sm:$0xff]  ;;  %v767_v18 = vld [vmem:[%s1402_s14 + $0x8] sm:$0xff] }
  0x15   :  { %v681_v9 = vld [vmem:[%s1400_s12] sm:$0xff] }
  0x16   :  { %v607_v12 = vld [vmem:[%s1399_s11] sm:$0x3]  ;;  %v1099_v13 = vpack.c.bf16 %v682_v10, %v681_v9 }
  0x17   :  { %1062 = vmatpush3.bf16.msra.mxu1 %v1059_v14  ;;  %v683_v14 = vld [vmem:[%s1400_s12 + $0x10] sm:$0xff]  ;;  %v766_v17 = vld [vmem:[%s1402_s14] sm:$0xff] }
  0x18   :  { %1064 = vmatprep.subr.bf16.mxu1 %v1063_v19 }
  0x1b   :  { %1066 = vmatpush3.bf16.msra.mxu1 %v1063_v19  ;;  %v1105_v19 = vpack.c.bf16 %v767_v18, %v766_v17 }
  0x1c   :  { %1095 = vmatprep.subr.bf16.mxu1 %v1142_v0 }
  0xe2   :  { %v956_v15 = vpop.f32.mrb[0].mxu0 }
  0xe3   :  { %v131_v16 = vpop.f32.mrb[1].mxu0 }
  0xe4   :  { %959 = vmatprep.mubr.msk.f32.mxu0 %vm148_vm1, %v131_v16 }
  0xe5   :  { %960 = vmatmul.mubr.msk.f32.vlgmr.msra.gmra.mrb[2].mxu0 %vm148_vm1, %v956_v15  ;;  %v684_v15 = vld [vmem:[%s1400_s12 + $0x18] sm:$0xff] }
  0xe6   :  { %985 = vmatprep.mubr.msk.f32.mxu0 %vm58_vm0, %v331_v27  ;;  %v1102_v16 = vpack.c.bf16 %v684_v15, %v683_v14 }
 0x1b8   :  { %v961_v21 = vpop.f32.mrb[2].mxu0 }
 0x1b9   :  { %v227_v22 = vadd.f32 %v961_v21, %v881_v20  ;;  %v221_v23 = vpop.f32.mrb[3].mxu0 }
 0x1ba   :  { %v222_v24 = vadd.f32 %v881_v20, %v221_v23  ;;  %v769_v23 = vld [vmem:[%s1402_s14 + $0x18] sm:$0xff] }
 0x1bb   :  { %v231_v26 = vmax.f32 %v227_v22, 0.0  ;;  %v768_v22 = vld [vmem:[%s1402_s14 + $0x10] sm:$0xff] }
 0x1bc   :  { %v230_v25 = vmax.f32 %v222_v24, 0.0  ;;  %v1108_v24 = vpack.c.bf16 %v769_v23, %v768_v22 }
 0x1be   :  { %978 = vmatprep.mubr.msk.f32.mxu1 %vm247_vm2, %v230_v25  ;;  %v896_v25 = vld [vmem:[%s1401_s13] ss:$0 sm:$0xff]  ;;  %s1145_s13 = smov [#allocation2]  }
 0x1bf   :  { %979 = vmatmul.mubr.msk.f32.vlgmr.msra.gmra.mrb[0].mxu1 %vm247_vm2, %v231_v26  ;;  %s871_s14 = sshll.u32 %s1145_s13, 4  ;;  %s872_s14 = int_to_ptr.vmem [resolvable:$true] %s871_s14 }
 0x1c0   :  { %1022 = vmatprep.mubr.msk.f32.mxu1 %vm1143_vm4, %v1144_v1  ;;  %p1123_p1 = scmp.lt.s32.totalorder %s872_s14, %s872_s14 }
 0x292   :  { %v980_v29 = vpop.f32.mrb[0].mxu1 }
 0x293   :  { %v326_v30 = vadd.f32 %v980_v29, %v884_v28  ;;  %v320_v31 = vpop.f32.mrb[1].mxu1 }
 0x294   :  { %v321_v32 = vadd.f32 %v884_v28, %v320_v31 }
 0x295   :  { %v330_v33 = vmax.f32 %v326_v30, 0.0  ;;  %v898_v30 = vld [vmem:[%s1403_s15] ss:$0 sm:$0xff]  ;;  %s1118_s15 = scalar_lea.vmem %s872_s14, 32 }
 0x296   :  { %v329_v36 = vmax.f32 %v321_v32, 0.0  ;;  %p1119_p0 = scmp.ne.s32.totalorder %s872_s14, %s1118_s15  ;;  %p1124_p2 = scmp.lt.s32.totalorder %s1118_s15, %s1118_s15 }
 0x298   :  { %v1067_v37 = vpack.c.bf16 %v330_v33, %v329_v36  ;;  %p1125_p3 = por %p1124_p2, %p1123_p1 }
 0x29a   :  { %1068 = vmatprep.subr.bf16.mxu0 %v1067_v37  ;;  %p1126_p4 = pnand %p1125_p3, %p1119_p0 }
 0x29b   :  { %1070 = vmatpush3.bf16.msra.mxu0 %v1067_v37 }
 0x29c   :  { %1072 = vmatprep.subr.bf16.mxu0 %v1071_v38 }
 0x29e   :  { %986 = vmatmul.mubr.msk.f32.vlgmr.msra.gmra.mrb[4].mxu0 %vm58_vm0, %v332_v41 }
 0x29f   :  { %1074 = vmatpush3.bf16.msra.mxu0 %v1071_v38 }
 0x2a0   :  { %1076 = vmatprep.subr.bf16.mxu0 %v1075_v42 }
 0x2a3   :  { %1078 = vmatpush3.bf16.msra.mxu0 %v1075_v42 }
 0x2a4   :  { %1080 = vmatprep.subr.bf16.mxu0 %v1079_v45 }
 0x371   :  { %v987_v48 = vpop.f32.mrb[4].mxu0 }
 0x372   :  { %v405_v49 = vpop.f32.mrb[5].mxu0 }
 0x373   :  { %996 = vmatprep.mubr.msk.f32.mxu0 %vm425_vm3, %v405_v49 }
 0x374   :  { %997 = vmatmul.mubr.msk.f32.vlgmr.msra.gmra.mrb[6].mxu0 %vm425_vm3, %v987_v48 }
 0x375   :  { %1082 = vmatpush3.bf16.msra.mxu0 %v1079_v45 }
 0x376   :  { %1084 = vmatprep.subr.bf16.mxu0 %v1083_v50 }
 0x379   :  { %1086 = vmatpush3.bf16.msra.mxu0 %v1083_v50 }
 0x37a   :  { %1088 = vmatprep.subr.bf16.mxu0 %v1087_v53 }
 0x37d   :  { %1090 = vmatpush3.bf16.msra.mxu0 %v1087_v53 }
 0x37e   :  { %1092 = vmatprep.subr.bf16.mxu0 %v1091_v56 }
 0x381   :  { %1094 = vmatpush3.bf16.msra.mxu0 %v1091_v56 }
 0x447   :  { %v998_v58 = vpop.f32.mrb[6].mxu0 }
 0x448   :  { %v504_v59 = vadd.f32 %v998_v58, %v889_v57  ;;  %v498_v60 = vpop.f32.mrb[7].mxu0 }
 0x449   :  { %v499_v61 = vadd.f32 %v889_v57, %v498_v60 }
 0x44a   :  { %v508_v63 = vmax.f32 %v504_v59, 0.0 }
 0x44b   :  { %v507_v62 = vmax.f32 %v499_v61, 0.0 }
 0x44d   :  { %1015 = vmatprep.mubr.msk.f32.mxu0 %vm247_vm2, %v507_v62 }
 0x44e   :  { %1016 = vmatmul.mubr.msk.f32.vlgmr.msra.gmra.mrb[8].mxu0 %vm247_vm2, %v508_v63 }
 0x521   :  { %v1017_v3 = vpop.f32.mrb[8].mxu0 }
 0x522   :  { %v602_v4 = vadd.f32 %v1017_v3, %v892_v2  ;;  %v596_v5 = vpop.f32.mrb[9].mxu0 }
 0x523   :  { %v597_v6 = vadd.f32 %v892_v2, %v596_v5 }
 0x524   :  { %v606_v7 = vmax.f32 %v602_v4, 0.0 }
 0x525   :  { %v605_v8 = vmax.f32 %v597_v6, 0.0 }
 0x527   :  { %v1096_v11 = vpack.c.bf16 %v606_v7, %v605_v8 }
 0x529   :  { %1097 = vmatpush3.bf16.msra.mxu1 %v1096_v11 }
 0x52a   :  { %1098 = vmatprep.subr.bf16.mxu1 %v1142_v0 }
 0x52c   :  { %1023 = vmatmul.mubr.msk.f32.vlgmr.msra.gmra.mrb[2].mxu1 %vm58_vm0, %v607_v12 }
 0x52d   :  { %1100 = vmatpush3.bf16.msra.mxu1 %v1099_v13  ;;  %1033 = vmatprep.mubr.msk.f32.mxu1 %vm1143_vm4, %v1144_v1 }
 0x52e   :  { %1101 = vmatprep.subr.bf16.mxu1 %v1142_v0 }
 0x531   :  { %1103 = vmatpush3.bf16.msra.mxu1 %v1102_v16 }
 0x532   :  { %1104 = vmatprep.subr.bf16.mxu1 %v1142_v0 }
 0x5ff   :  { %v677_v20 = vpop.f32.mrb[2].mxu1 }
 0x600   :  { %v1024_v21 = vpop.f32.mrb[3].mxu1  ;;  %1034 = vmatmul.mubr.msk.f32.vlgmr.msra.gmra.mrb[4].mxu1 %vm425_vm3, %v677_v20 }
 0x601   :  { %1106 = vmatpush3.bf16.msra.mxu1 %v1105_v19  ;;  %1044 = vmatprep.mubr.msk.f32.mxu1 %vm1143_vm4, %v1144_v1 }
 0x602   :  { %1107 = vmatprep.subr.bf16.mxu1 %v1142_v0 }
 0x605   :  { %1109 = vmatpush3.bf16.msra.mxu1 %v1108_v24 }
 0x6d3   :  { %v761_v26 = vpop.f32.mrb[4].mxu1 }
 0x6d4   :  { %v762_v27 = vadd.f32 %v896_v25, %v761_v26  ;;  %v1035_v28 = vpop.f32.mrb[5].mxu1 }
 0x6d6   :  { %v765_v29 = vmax.f32 %v762_v27, 0.0 }
 0x6d8   :  { %1045 = vmatmul.mubr.msk.f32.vlgmr.msra.gmra.mrb[6].mxu1 %vm425_vm3, %v765_v29 }
 0x7ab   :  { %v846_v31 = vpop.f32.mrb[6].mxu1 }
 0x7ac   :  { %v847_v32 = vadd.f32 %v898_v30, %v846_v31  ;;  %v1046_v33 = vpop.f32.mrb[7].mxu1 }
 0x7ae   :  { %v851_v34 = vsel %vm850_vm5, %v847_v32, -inf }
 0x7af   :  { %852 = vmax.xlane.f32.xlu0 %v851_v34 }
 0x83c   :  { %v853_v35 = vpop.xlane.xlu0 %852 }
 0x83d   :  { %v854_v36 = vsub.f32 %v847_v32, %v853_v35 }
 0x83f   :  { %v855_v37 = vmul.f32 1.442695, %v854_v36 }
 0x841   :  { %1114 = vpow2.f32 %v855_v37 }
 0x84b   :  { %v1115_v38 = vpop.eup %1114 }
 0x84c   :  { %v857_v39 = vsel %vm850_vm5, %v1115_v38, 0.0 }
 0x84d   :  { %858 = vadd.xlane.f32.xlu0 %v857_v39 }
 0x8da   :  { %v859_v40 = vpop.xlane.xlu0 %858 }
 0x8db   :  { %1116 = vlog2.f32 %v859_v40 }
 0x8e5   :  { %v1117_v41 = vpop.eup %1116 }
 0x8e6   :  { %v861_v42 = vmul.f32 0.6931472, %v1117_v41 }
 0x8e8   :  { %v862_v43 = vadd.f32 %v861_v42, %v853_v35 }
 0x8ea   :  { %v863_v44 = vsub.f32 %v847_v32, %v862_v43 }
 0x8ec   :  { %864 = vst.msk [vmem:[#allocation2] sm:$0x3] %vm850_vm5, %v863_v44 }
 0x8ed   :  { %1129 = shalt.err (!%p1126_p4)
}
 0x8ee   :  { %s1130_s1 = scalar_lea.hbm %s1404_s16, 32 }
 0x8ef   :  { %p1131_p5 = scmp.ne.s32.totalorder %s1404_s16, %s1130_s1  ;;  %p1134_p6 = scmp.lt.u32.totalorder %s1130_s1, %s1404_s16 }
 0x8f1   :  { %p1136_p7 = pnand %p1134_p6, %p1131_p5 }
 0x8f3   :  { %1139 = shalt.err (!%p1136_p7)
}
 0x8f4   :  { %874 = dma.vmem_to_hbm [thread:$0]  %s872_s14, 32, %s1404_s16, [#allocation3]  }
 0x8f5   :  { %1140 = dma.done.wait [#allocation3], 32  }
 0x8f6   :  { %1141 = vsyncadd [#allocation3], 4294967264 }
 0x8f7   :  { %878 = vsyncpa [#allocation3], 1 }

</bundles_post_ra>
